<compile_context>
chip_gen: v5e
topology: v5e:2x2
jax: 0.10.0
libtpu: 0.0.40
codegen_flags: <defaults>
</compile_context>

<pallas_src>
import jax
import jax.numpy as jnp
from jax.experimental import pallas as pl
from jax.experimental.pallas import tpu as pltpu


def bpnn_kernel(x_ref, w1_ref, b1_ref, w2_ref, b2_ref, w3_ref, b3_ref, o_ref):
    # x_ref: (2, T) -- batch on the 128-lane axis.
    x = x_ref[...]                                   # (2, T)
    w1 = w1_ref[...]                                 # (10, 2)  PyTorch-native (out, in)

    # fc1: K=2 -> two broadcast FMAs on the VPU (MXU would be <8% utilized).
    h1 = (w1[:, 0:1] * x[0:1, :]
          + w1[:, 1:2] * x[1:2, :]
          + b1_ref[...])                             # (10, T)
    h1 = jnp.maximum(h1, 0.0)                        # ReLU

    # fc2: 10x10 contraction -> MXU, amortized over the full lane tile.
    # HIGHEST precision for strict f32 parity with PyTorch (K=10, cost ~nil).
    h2 = jnp.dot(w2_ref[...], h1,
                 preferred_element_type=jnp.float32,
                 precision=jax.lax.Precision.HIGHEST) + b2_ref[...]   # (10, T)
    h2 = jnp.maximum(h2, 0.0)                        # ReLU

    # fc3: out=1 -> elementwise multiply + sublane reduce (VPU + XLU).
    y = jnp.sum(h2 * w3_ref[...], axis=0, keepdims=True) + b3_ref[...]  # (1, T)
    o_ref[...] = y.astype(o_ref.dtype)
    # TODO(synk): if a v5e bundle dump shows the single vst slot saturating,
    # sub-chunk the tile with an unrolled lax.fori_loop to keep h1/h2 in vregs.


def _round_up(v, m):
    return ((v + m - 1) // m) * m


def _choose_tiling(n, max_tile):
    """Pick a lane tile (multiple of 128) and grid length for n batch columns."""
    max_tile = max(128, (max_tile // 128) * 128)
    if n <= 128:
        return 128, 1
    if n <= 2 * max_tile:
        # Split into two roughly-equal tiles so v7x's 2 TensorCores both work.
        tile = max(128, _round_up(-(-n // 2), 128))
    else:
        tile = max_tile
    grid = -(-n // tile)
    if grid > 1 and grid % 2:
        # Keep the grid even for clean 2-TC sharding: shrink the tile a bit.
        grid += 1
        tile = max(128, _round_up(-(-n // grid), 128))
        grid = -(-n // tile)
    return tile, grid


def bpnn_apply(x_lanes, params, *, max_tile=16384):
    """Fast path.  x_lanes: (2, N) float32, batch on the lane (last) axis.

    Returns (1, N) float32 == fc3(relu(fc2(relu(fc1(x))))) per column.
    """
    w1, b1, w2, b2, w3, b3 = params
    h1_dim, in_dim = w1.shape            # (10, 2)
    h2_dim = w2.shape[0]                 # 10
    out_dim = w3.shape[0]                # 1
    n = x_lanes.shape[1]

    x_lanes = x_lanes.astype(jnp.float32)
    n_eff = n
    if n < 128:
        # Tiny batches: pad to one full 128-lane chunk (negligible copy).  For
        # n >= 128 ragged tails are handled by Pallas partial-block masking,
        # so no padded HBM copy is materialized.
        n_eff = 128
        x_lanes = jnp.pad(x_lanes, ((0, 0), (0, n_eff - n)))

    tile, grid = _choose_tiling(n_eff, max_tile)

    # Kernel-side parameter layout: biases as (out, 1) columns, fc3 weight as
    # a (10, 1) column for the sublane reduce.  All weights stay VMEM-resident
    # across grid steps via index_map lambda i: (0, 0).
    w1k = w1.astype(jnp.float32)                              # (10, 2)
    b1k = b1.astype(jnp.float32).reshape(h1_dim, 1)           # (10, 1)
    w2k = w2.astype(jnp.float32)                              # (10, 10)
    b2k = b2.astype(jnp.float32).reshape(h2_dim, 1)           # (10, 1)
    w3k = w3.astype(jnp.float32).reshape(out_dim, h2_dim).T   # (10, 1)
    b3k = b3.astype(jnp.float32).reshape(out_dim, 1)          # (1, 1)

    resident = lambda shape: pl.BlockSpec(shape, lambda i: (0, 0))

    # Honest scheduler hint: compute covers grid*tile lanes, HBM traffic ~n.
    flops = 2 * grid * tile * (in_dim * h1_dim + h1_dim * h2_dim + h2_dim * out_dim)
    param_bytes = 4 * (w1k.size + b1k.size + w2k.size + b2k.size + w3k.size + b3k.size)
    bytes_accessed = 4 * n_eff * (in_dim + out_dim) + param_bytes

    compiler_kwargs = dict(dimension_semantics=("parallel",))
    # ~224 B/element conservative per-step VMEM footprint (double-buffered
    # x/out tiles + the (16, T) f32 h1/h2 intermediates).  Only raise the
    # scoped-VMEM limit if a user-requested tile would bust v5e's 16 MiB
    # default; the default tile (~3.7 MB) is fine on v5e/v6e/v7x.
    vmem_est = 224 * tile + (1 << 20)
    if vmem_est > (12 << 20):
        compiler_kwargs["vmem_limit_bytes"] = min(2 * vmem_est, 64 << 20)

    out = pl.pallas_call(
        bpnn_kernel,
        out_shape=jax.ShapeDtypeStruct((out_dim, n_eff), jnp.float32),
        grid=(grid,),
        in_specs=[
            pl.BlockSpec((in_dim, tile), lambda i: (0, i)),   # x tile
            resident((h1_dim, in_dim)),                       # w1
            resident((h1_dim, 1)),                            # b1
            resident((h2_dim, h1_dim)),                       # w2
            resident((h2_dim, 1)),                            # b2
            resident((h2_dim, 1)),                            # w3 (column)
            resident((out_dim, 1)),                           # b3
        ],
        out_specs=pl.BlockSpec((out_dim, tile), lambda i: (0, i)),
        compiler_params=pltpu.CompilerParams(**compiler_kwargs),
        cost_estimate=pl.CostEstimate(
            flops=flops, transcendentals=0, bytes_accessed=bytes_accessed),
    )(x_lanes, w1k, b1k, w2k, b2k, w3k, b3k)

    return out[:, :n] if n_eff != n else out


def bpnn_forward(x, params, *, max_tile=16384):
    """PyTorch-layout compatibility wrapper: x (N, 2) -> (N, 1).

    The transpose / reshape here are the only extra HBM passes; callers that
    keep a feature-major (2, N) layout end-to-end should use bpnn_apply.
    """
    n = x.shape[0]
    out = bpnn_apply(x.astype(jnp.float32).T, params, max_tile=max_tile)
    return out.reshape(n, 1)


def init_params(key):
    """Deterministic synthetic parameters with PyTorch-native Linear shapes:
    weight (out, in), bias (out,)."""
    k1, k2, k3, k4, k5, k6 = jax.random.split(key, 6)
    w1 = jax.random.normal(k1, (10, 2), jnp.float32) * 0.5   # fc1.weight
    b1 = jax.random.normal(k2, (10,), jnp.float32) * 0.1     # fc1.bias
    w2 = jax.random.normal(k3, (10, 10), jnp.float32) * 0.5  # fc2.weight
    b2 = jax.random.normal(k4, (10,), jnp.float32) * 0.1     # fc2.bias
    w3 = jax.random.normal(k5, (1, 10), jnp.float32) * 0.5   # fc3.weight
    b3 = jax.random.normal(k6, (1,), jnp.float32) * 0.1      # fc3.bias
    return (w1, b1, w2, b2, w3, b3)


def bpnn_reference(x, params):
    """Pure-JAX reference (PyTorch semantics: x @ W.T + b)."""
    w1, b1, w2, b2, w3, b3 = params
    h1 = jnp.maximum(x @ w1.T + b1, 0.0)
    h2 = jnp.maximum(h1 @ w2.T + b2, 0.0)
    return h2 @ w3.T + b3


if __name__ == "__main__":
    key = jax.random.PRNGKey(0)
    kx1, kx2, kp = jax.random.split(key, 3)
    params = init_params(kp)

    # Small batch through the PyTorch-layout wrapper (single grid step,
    # lane-padded to one 128-chunk).
    x_small = jax.random.normal(kx1, (8, 2), jnp.float32)
    out_small = jax.block_until_ready(bpnn_forward(x_small, params))
    ref_small = bpnn_reference(x_small, params)
    assert out_small.shape == (8, 1), out_small.shape
    assert jnp.allclose(out_small, ref_small, atol=1e-4, rtol=1e-4), \
        "small-batch mismatch vs reference"

    # Ragged batch through the lane-dense fast path with a small max_tile:
    # exercises the multi-step even grid (4 steps of 256 lanes), both-TC
    # sharding on v7x, and the masked partial last block (no padded HBM copy).
    x_big = jax.random.normal(kx2, (1000, 2), jnp.float32)
    out_big = jax.block_until_ready(bpnn_apply(x_big.T, params, max_tile=256))
    ref_big = bpnn_reference(x_big, params)
    assert out_big.shape == (1, 1000), out_big.shape
    assert jnp.allclose(out_big.reshape(1000, 1), ref_big, atol=1e-4, rtol=1e-4), \
        "tiled-batch mismatch vs reference"

    # Default tile chooser path (splits into 2 x 512-lane tiles here).
    out_def = jax.block_until_ready(bpnn_forward(x_big, params))
    assert out_def.shape == (1000, 1), out_def.shape
    assert jnp.allclose(out_def, ref_big, atol=1e-4, rtol=1e-4), \
        "default-tile mismatch vs reference"

    print("KERNEL_OK")
</pallas_src>

<mosaic_0001>
module attributes {stable_mosaic.version = 11 : i64} {
  func.func @bpnn_kernel(%arg0: i32, %arg1: memref<2x128xf32, #tpu.memory_space<vmem>>, %arg2: memref<10x2xf32, #tpu.memory_space<vmem>>, %arg3: memref<10x1xf32, #tpu.memory_space<vmem>>, %arg4: memref<10x10xf32, #tpu.memory_space<vmem>>, %arg5: memref<10x1xf32, #tpu.memory_space<vmem>>, %arg6: memref<10x1xf32, #tpu.memory_space<vmem>>, %arg7: memref<1x1xf32, #tpu.memory_space<vmem>>, %arg8: memref<1x128xf32, #tpu.memory_space<vmem>>) attributes {dimension_semantics = [#tpu.dimension_semantics<parallel>], iteration_bounds = array<i64: 1>, scalar_prefetch = 0 : i64, scratch_operands = 0 : i64, tpu.core_type = #tpu.core_type<tc>, window_params = [{transform_indices = @transform_0, window_bounds = array<i64: 2, 128>}, {pipeline_mode = #tpu.pipeline_mode<synchronous>, transform_indices = @transform_1, window_bounds = array<i64: 10, 2>}, {pipeline_mode = #tpu.pipeline_mode<synchronous>, transform_indices = @transform_2, window_bounds = array<i64: 10, 1>}, {pipeline_mode = #tpu.pipeline_mode<synchronous>, transform_indices = @transform_3, window_bounds = array<i64: 10, 10>}, {pipeline_mode = #tpu.pipeline_mode<synchronous>, transform_indices = @transform_4, window_bounds = array<i64: 10, 1>}, {pipeline_mode = #tpu.pipeline_mode<synchronous>, transform_indices = @transform_5, window_bounds = array<i64: 10, 1>}, {pipeline_mode = #tpu.pipeline_mode<synchronous>, transform_indices = @transform_6, window_bounds = array<i64: 1, 1>}, {transform_indices = @transform_7, window_bounds = array<i64: 1, 128>}]} {
    %c0 = arith.constant 0 : index
    %c0_0 = arith.constant 0 : index
    %0 = vector.load %arg1[%c0, %c0_0] : memref<2x128xf32, #tpu.memory_space<vmem>>, vector<2x128xf32>
    %c0_1 = arith.constant 0 : index
    %c0_2 = arith.constant 0 : index
    %1 = vector.load %arg2[%c0_1, %c0_2] : memref<10x2xf32, #tpu.memory_space<vmem>>, vector<10x2xf32>
    %2 = vector.extract_strided_slice %1 {offsets = [0, 0], sizes = [10, 1], strides = [1, 1]} : vector<10x2xf32> to vector<10x1xf32>
    %3 = vector.extract_strided_slice %0 {offsets = [0, 0], sizes = [1, 128], strides = [1, 1]} : vector<2x128xf32> to vector<1x128xf32>
    %4 = vector.broadcast %2 : vector<10x1xf32> to vector<10x128xf32>
    %5 = vector.broadcast %3 : vector<1x128xf32> to vector<10x128xf32>
    %6 = arith.mulf %4, %5 : vector<10x128xf32>
    %7 = vector.extract_strided_slice %1 {offsets = [0, 1], sizes = [10, 1], strides = [1, 1]} : vector<10x2xf32> to vector<10x1xf32>
    %8 = vector.extract_strided_slice %0 {offsets = [1, 0], sizes = [1, 128], strides = [1, 1]} : vector<2x128xf32> to vector<1x128xf32>
    %9 = vector.broadcast %7 : vector<10x1xf32> to vector<10x128xf32>
    %10 = vector.broadcast %8 : vector<1x128xf32> to vector<10x128xf32>
    %11 = arith.mulf %9, %10 : vector<10x128xf32>
    %12 = arith.addf %6, %11 : vector<10x128xf32>
    %c0_3 = arith.constant 0 : index
    %c0_4 = arith.constant 0 : index
    %13 = vector.load %arg3[%c0_3, %c0_4] : memref<10x1xf32, #tpu.memory_space<vmem>>, vector<10x1xf32>
    %14 = vector.broadcast %13 : vector<10x1xf32> to vector<10x128xf32>
    %15 = arith.addf %12, %14 : vector<10x128xf32>
    %cst = arith.constant 0.000000e+00 : f32
    %16 = vector.broadcast %cst : f32 to vector<10x128xf32>
    %17 = arith.maximumf %15, %16 : vector<10x128xf32>
    %c0_5 = arith.constant 0 : index
    %c0_6 = arith.constant 0 : index
    %18 = vector.load %arg4[%c0_5, %c0_6] : memref<10x10xf32, #tpu.memory_space<vmem>>, vector<10x10xf32>
    %cst_7 = arith.constant dense<0.000000e+00> : vector<10x128xf32>
    %19 = tpu.matmul %18, %17, %cst_7 {dimension_numbers = #tpu.dot_dimension_numbers<[1], [0], [0], [1], [0, 0, 1, 1], [], []>, precision = #tpu.contract_precision<fp32>} : vector<10x10xf32>, vector<10x128xf32>, vector<10x128xf32> -> vector<10x128xf32>
    %c0_8 = arith.constant 0 : index
    %c0_9 = arith.constant 0 : index
    %20 = vector.load %arg5[%c0_8, %c0_9] : memref<10x1xf32, #tpu.memory_space<vmem>>, vector<10x1xf32>
    %21 = vector.broadcast %20 : vector<10x1xf32> to vector<10x128xf32>
    %22 = arith.addf %19, %21 : vector<10x128xf32>
    %cst_10 = arith.constant 0.000000e+00 : f32
    %23 = vector.broadcast %cst_10 : f32 to vector<10x128xf32>
    %24 = arith.maximumf %22, %23 : vector<10x128xf32>
    %c0_11 = arith.constant 0 : index
    %c0_12 = arith.constant 0 : index
    %25 = vector.load %arg6[%c0_11, %c0_12] : memref<10x1xf32, #tpu.memory_space<vmem>>, vector<10x1xf32>
    %26 = vector.broadcast %25 : vector<10x1xf32> to vector<10x128xf32>
    %27 = arith.mulf %24, %26 : vector<10x128xf32>
    %cst_13 = arith.constant dense<0.000000e+00> : vector<128xf32>
    %28 = vector.multi_reduction <add>, %27, %cst_13 [0] : vector<10x128xf32> to vector<128xf32>
    %29 = vector.shape_cast %28 : vector<128xf32> to vector<1x128xf32>
    %c0_14 = arith.constant 0 : index
    %c0_15 = arith.constant 0 : index
    %30 = vector.load %arg7[%c0_14, %c0_15] : memref<1x1xf32, #tpu.memory_space<vmem>>, vector<1x1xf32>
    %31 = vector.broadcast %30 : vector<1x1xf32> to vector<1x128xf32>
    %32 = arith.addf %29, %31 : vector<1x128xf32>
    %c0_16 = arith.constant 0 : index
    %c0_17 = arith.constant 0 : index
    %33 = vector.load %arg8[%c0_16, %c0_17] : memref<1x128xf32, #tpu.memory_space<vmem>>, vector<1x128xf32>
    tpu.vector_store %arg8[%c0_16, %c0_17], %32 {strides = array<i32>} : memref<1x128xf32, #tpu.memory_space<vmem>>, vector<1x128xf32>,
    return
  }
  func.func @transform_0(%arg0: i32) -> (i32, i32) {
    %c0_i32 = arith.constant 0 : i32
    %c0_i32_0 = arith.constant 0 : i32
    return %c0_i32, %arg0 : i32, i32
  }
  func.func @transform_1(%arg0: i32) -> (i32, i32) {
    %c0_i32 = arith.constant 0 : i32
    %c0_i32_0 = arith.constant 0 : i32
    %c0_i32_1 = arith.constant 0 : i32
    return %c0_i32, %c0_i32_0 : i32, i32
  }
  func.func @transform_2(%arg0: i32) -> (i32, i32) {
    %c0_i32 = arith.constant 0 : i32
    %c0_i32_0 = arith.constant 0 : i32
    %c0_i32_1 = arith.constant 0 : i32
    return %c0_i32, %c0_i32_0 : i32, i32
  }
  func.func @transform_3(%arg0: i32) -> (i32, i32) {
    %c0_i32 = arith.constant 0 : i32
    %c0_i32_0 = arith.constant 0 : i32
    %c0_i32_1 = arith.constant 0 : i32
    return %c0_i32, %c0_i32_0 : i32, i32
  }
  func.func @transform_4(%arg0: i32) -> (i32, i32) {
    %c0_i32 = arith.constant 0 : i32
    %c0_i32_0 = arith.constant 0 : i32
    %c0_i32_1 = arith.constant 0 : i32
    return %c0_i32, %c0_i32_0 : i32, i32
  }
  func.func @transform_5(%arg0: i32) -> (i32, i32) {
    %c0_i32 = arith.constant 0 : i32
    %c0_i32_0 = arith.constant 0 : i32
    %c0_i32_1 = arith.constant 0 : i32
    return %c0_i32, %c0_i32_0 : i32, i32
  }
  func.func @transform_6(%arg0: i32) -> (i32, i32) {
    %c0_i32 = arith.constant 0 : i32
    %c0_i32_0 = arith.constant 0 : i32
    %c0_i32_1 = arith.constant 0 : i32
    return %c0_i32, %c0_i32_0 : i32, i32
  }
  func.func @transform_7(%arg0: i32) -> (i32, i32) {
    %c0_i32 = arith.constant 0 : i32
    %c0_i32_0 = arith.constant 0 : i32
    return %c0_i32, %arg0 : i32, i32
  }
}

</mosaic_0001>

<bundles_post_ra>
// kernel: tpu_custom_call.1
= control target key start
LH: loop header
LB: loop body
LE: loop exit
PB: predicated region body
PF: predicated region fallthrough
CT: control target
= control target key end

     0   :  { %s479_s0 = inlined_call_operand.vmem [shape: f32[2,128], index: 0, kind: input, shape index: {}]   ;;  %s480_s1 = inlined_call_operand.vmem [shape: f32[10,2], index: 1, kind: input, shape index: {}]   ;;  %s481_s2 = inlined_call_operand.vmem [shape: f32[10,1], index: 2, kind: input, shape index: {}]   ;;  %s482_s3 = inlined_call_operand.vmem [shape: f32[10,10], index: 3, kind: input, shape index: {}]   ;;  %s483_s4 = inlined_call_operand.vmem [shape: f32[10,1], index: 4, kind: input, shape index: {}]   ;;  %s484_s5 = inlined_call_operand.vmem [shape: f32[10,1], index: 5, kind: input, shape index: {}]   ;;  %s485_s6 = inlined_call_operand.<no memory space> [shape: f32[1,1], index: 6, kind: input, shape index: {}]   ;;  %s486_s7 = inlined_call_operand.hbm [shape: f32[1,128], index: 7, kind: output, shape index: {}]  }
   0x1   :  { %v12_v0 = vstv %s485_s6 }
   0x2   :  { %13 = vst [vmem:[#allocation2] sm:$0x1] %v12_v0 }
   0x3   :  { %v31_v1 = vld [vmem:[%s480_s1 + $0x8] sm:$0x3]  ;;  %v30_v2 = vld [vmem:[%s480_s1] sm:$0xff]  ;;  %v378_v3 = vmov 0  }
   0x4   :  { %347 = vset.pattern.permute.xlu1 %v378_v3  ;;  %345 = vset.pattern.permute.xlu0 %v378_v3  ;;  %v59_v4 = vld [vmem:[%s481_s2 + $0x8] sm:$0x3] }
   0x5   :  { %39 = vperm.xlu0 %345, %v31_v1   ;;  %34 = vperm.xlu1 %347, %v30_v2  }
   0x6   :  { %14 = vsyncpa [#allocation4], 0  ;;  %349 = vset.pattern.permute.xlu2 %v378_v3  ;;  %v58_v5 = vld [vmem:[%s481_s2] sm:$0xff]  ;;  %v379_v6 = vmov 1   ;;  %vm88_vm0 = vcmask 80896   ;;  %vm95_vm1 = vcmask 1041408  }
   0x7   :  { %67 = vperm.xlu2 %349, %v59_v4   ;;  %v76_v7 = vld [vmem:[%s483_s4] sm:$0xff]  ;;  %v75_v10 = vld [vmem:[%s482_s3 + $0x8] sm:$0x3]  ;;  %s329_s22 = sshll.u32 %s486_s7, 4  ;;  %s330_s22 = int_to_ptr.hbm [resolvable:$true] %s329_s22 }
   0x8   :  { %v74_v9 = vld [vmem:[%s482_s3] sm:$0xff]  ;;  %v93_v14 = vsel %vm88_vm0, %v75_v10, 0  ;;  %v77_v25 = vld [vmem:[%s483_s4 + $0x8] sm:$0x3] }
   0x9   :  { %v313_v8 = vld [vmem:[#allocation2] sm:$0x1]  ;;  %v90_v13 = vsel %vm88_vm0, %v74_v9, 0  ;;  %v450_v18 = vand.u32 4294901760, %v93_v14  ;;  %v292_v42 = vld [vmem:[%s484_s5 + $0x8] sm:$0x3] }
   0xa   :  { %v29_v16 = vld [vmem:[%s479_s0] sm:$0x3]  ;;  %v448_v17 = vand.u32 4294901760, %v90_v13 }
   0xb   :  { %v42_v19 = vperm.slane %v29_v16, 0  ;;  %v53_v20 = vperm.slane %v29_v16, 1  ;;  %v454_v22 = vsub.f32 %v93_v14, %v450_v18  ;;  %v291_v41 = vld [vmem:[%s484_s5] sm:$0xff]  ;;  %s380_s5 = smov [#allocation3]  }
   0xc   :  { %v118_v21 = vsub.f32 %v90_v13, %v448_v17  ;;  %s327_s19 = sshll.u32 %s380_s5, 4  ;;  %s328_s19 = int_to_ptr.vmem [resolvable:$true] %s327_s19 }
   0xd   :  { %346 = vset.pattern.permute.xlu0 %v379_v6  ;;  %348 = vset.pattern.permute.xlu1 %v379_v6  ;;  %v127_v33 = vand.u32 4294901760, %v454_v22 }
   0xe   :  { %50 = vperm.xlu0 %346, %v31_v1   ;;  %46 = vperm.xlu1 %348, %v30_v2   ;;  %v119_v32 = vand.u32 4294901760, %v118_v21 }
   0xf   :  { %62 = vperm.xlu2 %349, %v58_v5   ;;  %v128_v40 = vsub.f32 %v454_v22, %v127_v33 }
  0x10   :  { %v120_v39 = vsub.f32 %v118_v21, %v119_v32 }
  0x11   :  { %v129_v47 = vand.u32 4294901760, %v128_v40 }
  0x12   :  { %v121_v46 = vand.u32 4294901760, %v120_v39 }
  0x16   :  { %350 = vset.pattern.permute.xlu1 %v378_v3  ;;  %351 = vset.pattern.permute.xlu0 %v378_v3 }
  0x17   :  { %80 = vperm.xlu2 %349, %v76_v7   ;;  %85 = vperm.xlu1 %350, %v77_v25  }
  0x18   :  { %300 = vperm.xlu0 %351, %v292_v42  }
  0x1f   :  { %316 = vperm.xlu2 %349, %v313_v8   ;;  %295 = vperm.xlu1 %350, %v291_v41  }
  0x61   :  { %v68_v15 = vpop.permute.xlu2 %67 }
  0x69   :  { %v63_v34 = vpop.permute.xlu2 %62 }
  0x71   :  { %v81_v61 = vpop.permute.xlu2 %80 }
  0x77   :  { %v40_v11 = vpop.permute.xlu0 %39  ;;  %v35_v12 = vpop.permute.xlu1 %34 }
  0x78   :  { %v44_v26 = vmul.f32 %v42_v19, %v40_v11  ;;  %v43_v27 = vmul.f32 %v42_v19, %v35_v12 }
  0x80   :  { %v51_v23 = vpop.permute.xlu0 %50  ;;  %v47_v24 = vpop.permute.xlu1 %46 }
  0x81   :  { %v55_v28 = vmul.f32 %v53_v20, %v51_v23  ;;  %v54_v29 = vmul.f32 %v53_v20, %v47_v24 }
  0x83   :  { %v57_v30 = vadd.f32 %v55_v28, %v44_v26  ;;  %v56_v31 = vadd.f32 %v54_v29, %v43_v27 }
  0x85   :  { %v71_v35 = vadd.f32 %v68_v15, %v57_v30  ;;  %v70_v36 = vadd.f32 %v63_v34, %v56_v31  ;;  %v317_v30 = vpop.permute.xlu2 %316 }
  0x87   :  { %v73_v37 = vmax.f32 %v71_v35, 0.0  ;;  %v72_v38 = vmax.f32 %v70_v36, 0.0 }
  0x89   :  { %v97_v43 = vsel %vm95_vm1, %v73_v37, 0  ;;  %v115_v44 = vand.u32 4294901760, %v72_v38  ;;  %v86_v0 = vpop.permute.xlu1 %85 }
  0x8a   :  { %v113_v45 = vand.u32 4294901760, %v97_v43  ;;  %v301_v19 = vpop.permute.xlu0 %300 }
  0x8b   :  { %v155_v48 = vsub.f32 %v72_v38, %v115_v44 }
  0x8c   :  { %114 = vmatpush.msra.mxu0 %v113_v45  ;;  %338 = vmatpush.msra.mxu2 %v113_v45  ;;  %v149_v49 = vsub.f32 %v97_v43, %v113_v45 }
  0x8d   :  { %v156_v50 = vand.u32 4294901760, %v155_v48 }
  0x8e   :  { %116 = vmatpush.msra.mxu0 %v115_v44  ;;  %339 = vmatpush.msra.mxu2 %v115_v44  ;;  %v150_v51 = vand.u32 4294901760, %v149_v49 }
  0x8f   :  { %122 = vmatmul.f32.vlgmr.msra.gmra.mxu0 %v121_v46  ;;  %130 = vmatmul.f32.vlgmr.msra.gmra.mxu2 %v129_v47  ;;  %v157_v53 = vsub.f32 %v155_v48, %v156_v50 }
  0x90   :  { %185 = vmatpush.msrb.mxu2 %v149_v49  ;;  %248 = vmatpush.msrb.mxu0 %v150_v51  ;;  %v151_v52 = vsub.f32 %v149_v49, %v150_v51 }
  0x91   :  { %v158_v55 = vand.u32 4294901760, %v157_v53 }
  0x92   :  { %188 = vmatpush.msrb.mxu2 %v155_v48  ;;  %252 = vmatpush.msrb.mxu0 %v156_v50  ;;  %v152_v54 = vand.u32 4294901760, %v151_v52 }
  0x94   :  { %153 = vmatpush.msra.mxu1 %v152_v54  ;;  %340 = vmatpush.msra.mxu3 %v152_v54 }
  0x96   :  { %159 = vmatpush.msra.mxu1 %v158_v55  ;;  %341 = vmatpush.msra.mxu3 %v158_v55 }
  0x97   :  { %161 = vmatmul.f32.vlgmr.msra.gmra.mxu1 %v448_v17  ;;  %165 = vmatmul.f32.vlgmr.msra.gmra.mxu3 %v450_v18 }
  0x98   :  { %191 = vmatmul.f32.vlgmr.msrb.gmra.mxu2 %v118_v21  ;;  %215 = vmatpush.msrb.mxu3 %v113_v45  ;;  %v296_v21 = vpop.permute.xlu1 %295 }
  0x99   :  { %277 = vmatpush.msrb.mxu1 %v113_v45  ;;  %254 = vmatmul.f32.vlgmr.msrb.gmra.mxu0 %v448_v17 }
  0x9a   :  { %217 = vmatpush.msrb.mxu3 %v115_v44 }
  0x9b   :  { %279 = vmatpush.msrb.mxu1 %v115_v44 }
  0x9f   :  { %221 = vmatmul.f32.vlgmr.msrb.gmra.mxu3 %v119_v32  ;;  %281 = vmatmul.f32.vlgmr.msrb.gmra.mxu1 %v448_v17  ;;  %v319_v32 = vperm.slane %v317_v30, 0 }
  0xa0   :  { %196 = vmatmul.f32.gmra.mxu2 %v454_v22 }
  0xa1   :  { %258 = vmatmul.f32.gmra.mxu0 %v450_v18 }
  0xa7   :  { %227 = vmatmul.f32.gmra.mxu3 %v127_v33  ;;  %285 = vmatmul.f32.gmra.mxu1 %v450_v18 }
 0x10c   :  { %v123_v57 = vpop.f32.mrf.mxu0 }
 0x10d   :  { %v124_v62 = vadd.f32 %v123_v57, %v81_v61 }
 0x112   :  { %v131_v56 = vpop.f32.mrf.mxu2 }
 0x113   :  { %v132_v5 = vadd.f32 %v131_v56, %v86_v0 }
 0x114   :  { %v162_v58 = vpop.f32.mrf.mxu1 }
 0x115   :  { %v163_v63 = vadd.f32 %v162_v58, %v124_v62 }
 0x116   :  { %v255_v1 = vpop.f32.mrf.mxu0 }
 0x11a   :  { %v166_v59 = vpop.f32.mrf.mxu3 }
 0x11b   :  { %v192_v60 = vpop.f32.mrf.mxu2  ;;  %v167_v8 = vadd.f32 %v166_v59, %v132_v5 }
 0x11c   :  { %v193_v2 = vadd.f32 %v192_v60, %v163_v63  ;;  %v282_v4 = vpop.f32.mrf.mxu1 }
 0x11e   :  { %v259_v12 = vpop.f32.mrf.mxu0 }
 0x122   :  { %v222_v3 = vpop.f32.mrf.mxu3 }
 0x123   :  { %v223_v6 = vadd.f32 %v222_v3, %v193_v2  ;;  %v197_v7 = vpop.f32.mrf.mxu2 }
 0x124   :  { %v198_v10 = vadd.f32 %v197_v7, %v167_v8  ;;  %v286_v15 = vpop.f32.mrf.mxu1 }
 0x125   :  { %v256_v9 = vadd.f32 %v255_v1, %v223_v6 }
 0x127   :  { %v283_v14 = vadd.f32 %v282_v4, %v256_v9 }
 0x129   :  { %v289_v18 = vmax.f32 %v283_v14, 0.0 }
 0x12a   :  { %v228_v11 = vpop.f32.mrf.mxu3 }
 0x12b   :  { %v229_v13 = vadd.f32 %v228_v11, %v198_v10  ;;  %v303_v23 = vmul.f32 %v296_v21, %v289_v18 }
 0x12d   :  { %v260_v16 = vadd.f32 %v259_v12, %v229_v13 }
 0x12f   :  { %v287_v17 = vadd.f32 %v286_v15, %v260_v16 }
 0x131   :  { %v290_v20 = vmax.f32 %v287_v17, 0.0 }
 0x133   :  { %v304_v22 = vmul.f32 %v301_v19, %v290_v20 }
 0x135   :  { %v305_v24 = vsel %vm95_vm1, %v304_v22, 0.0 }
 0x136   :  { %v306_v25 = vadd.f32 %v305_v24, %v303_v23 }
 0x138   :  { %v307_v26 = vrot.slane %v306_v25, 4 }
 0x13a   :  { %v308_v27 = vadd.f32 %v307_v26, %v306_v25 }
 0x13c   :  { %v309_v28 = vrot.slane %v308_v27, 2 }
 0x13e   :  { %v310_v29 = vadd.f32 %v309_v28, %v308_v27 }
 0x140   :  { %v311_v31 = vrot.slane %v310_v29, 1 }
 0x142   :  { %v312_v33 = vadd.f32 %v311_v31, %v310_v29 }
 0x144   :  { %v320_v34 = vadd.f32 %v319_v32, %v312_v33 }
 0x146   :  { %321 = vst [vmem:[#allocation3] sm:$0x1] %v320_v34 }
 0x147   :  { %332 = dma.vmem_to_hbm [thread:$0]  %s328_s19, 16, %s330_s22, [#allocation4]  }
 0x148   :  { %376 = dma.done.wait [#allocation4], 16  }
 0x149   :  { %377 = vsyncadd [#allocation4], 4294967280 }
 0x14a   :  { %337 = vsyncpa [#allocation4], 1 }

</bundles_post_ra>
